<compile_context>
chip_gen: v6e
topology: v6e:2x2x1
jax: 0.10.0
libtpu: 0.0.40
codegen_flags: <defaults>
</compile_context>

<pallas_src>
import functools
import math

import jax
import jax.numpy as jnp
import numpy as np
from jax import lax
from jax.experimental import pallas as pl
from jax.experimental.pallas import tpu as pltpu

F32 = jnp.float32


def _round_up(a, b):
    return (a + b - 1) // b * b


# ------------------------------------------------------------------
# STFT basis (reproduces init_kernel(): rfft(eye(fft)/S_)[:frame_len] * sqrt-hann)
# ------------------------------------------------------------------
def make_stft_kernels(frame_len, frame_hop, num_fft=None):
    fft = num_fft if num_fft else 2 ** math.ceil(math.log2(frame_len))
    n = np.arange(frame_len, dtype=np.float64)
    # torch.hann_window(frame_len) is periodic; the module takes ** 0.5
    w = np.sqrt(0.5 * (1.0 - np.cos(2.0 * np.pi * n / frame_len)))
    s_ = 0.5 * math.sqrt(fft * fft / frame_hop)
    k = np.arange(fft // 2 + 1, dtype=np.float64)
    ang = 2.0 * np.pi * np.outer(k, n) / fft                   # (F, L)
    kr = (np.cos(ang) / s_) * w[None, :]                       # real basis
    ki = (-np.sin(ang) / s_) * w[None, :]                      # imag basis
    return jnp.asarray(kr, F32), jnp.asarray(ki, F32)


# ------------------------------------------------------------------
# atan2 from guaranteed-lowerable primitives (div / sqrt-free selects / poly).
# Mosaic atan2 lowering is not guaranteed on every jax build, so the phase is
# built from basic VPU/EUP ops (Cephes atanf polynomial, ~1e-6 rad error).
# ------------------------------------------------------------------
_PI = math.pi
_PI_2 = math.pi / 2.0
_PI_4 = math.pi / 4.0
_TAN_PI_8 = 0.4142135623730951


def _atan2(y, x):
    ax = jnp.abs(x)
    ay = jnp.abs(y)
    mx = jnp.maximum(ax, ay)
    mn = jnp.minimum(ax, ay)
    z = mn / jnp.where(mx > 0.0, mx, 1.0)                      # in [0, 1]; 0 at (0, 0)
    big = z > _TAN_PI_8
    zr = jnp.where(big, (z - 1.0) / (z + 1.0), z)              # |zr| <= tan(pi/8)
    s = zr * zr
    p = ((((8.05374449538e-2 * s - 1.38776856032e-1) * s
           + 1.99777106478e-1) * s - 3.33329491539e-1) * s) * zr + zr
    p = jnp.where(big, p + _PI_4, p)                           # atan(z) on [0, 1]
    p = jnp.where(ay > ax, _PI_2 - p, p)                       # undo min/max swap
    p = jnp.where(x < 0.0, _PI - p, p)                         # quadrants II / III
    return jnp.where(y < 0.0, -p, p)                           # lower half-plane


# ------------------------------------------------------------------
# Fused STFT kernel: per (batch, time-tile) grid cell
#   acc(2Fp, tile_t) = sum_j basis[j](2Fp, C) @ chunks[t+j .. t+j+tile_t)(tile_t, C)^T
#   m = sqrt(r^2 + i^2) ; p = atan2(i, r)   ->   stored straight into (B, F, T)
# ------------------------------------------------------------------
def _make_kernel(Fdim, Fp, n_sub, tile_t):
    nt_dims = (((1,), (1,)), ((), ()))                         # contract the chunk axis (NT)

    def kernel(basis_ref, x_ref, m_ref, p_ref):
        t = pl.program_id(1)
        base = pl.multiple_of(t * tile_t, tile_t)
        acc = None
        for j in range(n_sub):                                 # static, unrolled
            xj = x_ref[0, pl.ds(base + j, tile_t), :]          # (tile_t, C) sublane slice
            d = lax.dot_general(basis_ref[j], xj, nt_dims,
                                preferred_element_type=jnp.float32)   # (2Fp, tile_t)
            acc = d if acc is None else acc + d
        r = acc[:Fp, :]                                        # sublane-aligned static views
        i = acc[Fp:, :]
        m_ref[0] = jnp.sqrt(r * r + i * i)[:Fdim, :]
        p_ref[0] = _atan2(i, r)[:Fdim, :]

    return kernel


def stft_forward(x, kr, ki, *, frame_hop):
    """STFT.forward: x (B, S) or (B, 1, S)  ->  (m, p), each (B, F, T)."""
    if x.ndim == 3:
        if x.shape[1] != 1:
            raise RuntimeError("expect a single input channel")
        x = x[:, 0, :]
    if x.ndim != 2:
        raise RuntimeError(f"Expect 2D/3D tensor, but got {x.ndim}D")
    x = x.astype(F32)

    Fdim, L = kr.shape
    hop = frame_hop
    B, S = x.shape
    if S < L:
        raise RuntimeError("signal shorter than one frame")
    T = (S - L) // hop + 1

    # ---- frame the signal without any gather / overlap expansion (fast path) ----
    if L % hop == 0:
        n_sub, C = L // hop, hop
        s_used = (T - 1) * hop + L
        xc = x[:, :s_used].reshape(B, s_used // C, C)          # (B, Nc, C) -- free reshape
    else:
        # TODO(synk): when hop does not divide frame_len we fall back to an
        # explicit framed copy; the fast path covers the standard STFT configs.
        n_sub, C = 1, L
        idx = jnp.arange(T)[:, None] * hop + jnp.arange(L)[None, :]
        xc = x[:, idx]                                         # (B, T, L)

    # ---- stacked, sublane-padded basis: rows [0:F)=real, [Fp:Fp+F)=imag ----
    Fp = _round_up(Fdim, 8)
    stk = jnp.concatenate([jnp.pad(kr, ((0, Fp - Fdim), (0, 0))),
                           jnp.pad(ki, ((0, Fp - Fdim), (0, 0)))], axis=0)   # (2Fp, L)
    basis = jnp.transpose(stk.reshape(2 * Fp, n_sub, C), (1, 0, 2))          # (n_sub, 2Fp, C)

    # ---- time tiling: T on lanes; one wide lane-aligned tile for small inputs ----
    tile_t = max(128, min(1024, _round_up(T, 128)))
    n_t = pl.cdiv(T, tile_t)
    t_pad = n_t * tile_t
    nc_pad = _round_up(t_pad + n_sub - 1, 8)
    xc = jnp.pad(xc, ((0, 0), (0, nc_pad - xc.shape[1]), (0, 0)))

    out_spec = pl.BlockSpec((1, Fdim, tile_t), lambda b, t: (b, 0, t))
    m, p = pl.pallas_call(
        _make_kernel(Fdim, Fp, n_sub, tile_t),
        out_shape=[jax.ShapeDtypeStruct((B, Fdim, t_pad), F32)] * 2,
        grid=(B, n_t),
        in_specs=[
            pl.BlockSpec((n_sub, 2 * Fp, C), lambda b, t: (0, 0, 0)),   # resident basis
            pl.BlockSpec((1, nc_pad, C), lambda b, t: (b, 0, 0)),       # per-batch chunk slab
        ],
        out_specs=[out_spec, out_spec],
        compiler_params=pltpu.CompilerParams(
            dimension_semantics=("parallel", "parallel")),
    )(basis, xc)
    return m[:, :, :T], p[:, :, :T]


# ------------------------------------------------------------------
# Main
# ------------------------------------------------------------------
if __name__ == "__main__":
    frame_len, frame_hop, num_fft = 64, 32, 64
    Fdim = num_fft // 2 + 1                                    # 33
    B, T = 2, 8
    S = frame_len + frame_hop * (T - 1)                        # 288

    key = jax.random.PRNGKey(0)
    x = jax.random.normal(key, (B, S), dtype=F32)

    kr, ki = make_stft_kernels(frame_len, frame_hop, num_fft)
    fwd = jax.jit(functools.partial(stft_forward, frame_hop=frame_hop))

    m, p = fwd(x, kr, ki)
    jax.block_until_ready((m, p))

    assert m.shape == (B, Fdim, T), m.shape
    assert p.shape == (B, Fdim, T), p.shape
    assert bool(jnp.all(jnp.isfinite(m))) and bool(jnp.all(jnp.isfinite(p)))

    # N x 1 x S input path must match the N x S path
    m3, p3 = fwd(x[:, None, :], kr, ki)
    np.testing.assert_allclose(np.asarray(m3), np.asarray(m), rtol=0, atol=1e-6)
    np.testing.assert_allclose(np.asarray(p3), np.asarray(p), rtol=0, atol=1e-6)

    # pure-JAX reference (framed einsum, full-precision)
    idx = jnp.arange(T)[:, None] * frame_hop + jnp.arange(frame_len)[None, :]
    fr = x[:, idx]                                             # (B, T, L)
    r_ref = jnp.einsum("fl,btl->bft", kr, fr, precision=jax.lax.Precision.HIGHEST)
    i_ref = jnp.einsum("fl,btl->bft", ki, fr, precision=jax.lax.Precision.HIGHEST)
    m_ref = jnp.sqrt(r_ref * r_ref + i_ref * i_ref)
    np.testing.assert_allclose(np.asarray(m), np.asarray(m_ref), rtol=2e-2, atol=2e-2)
    # phase check via reconstruction (robust where r, i are tiny / exactly zero)
    np.testing.assert_allclose(np.asarray(m * jnp.cos(p)), np.asarray(r_ref),
                               rtol=0, atol=2e-2)
    np.testing.assert_allclose(np.asarray(m * jnp.sin(p)), np.asarray(i_ref),
                               rtol=0, atol=2e-2)

    print("KERNEL_OK")
</pallas_src>

<mosaic_0001>
module attributes {stable_mosaic.version = 11 : i64} {
  func.func @kernel(%arg0: i32, %arg1: i32, %arg2: memref<2x80x32xf32, #tpu.memory_space<vmem>>, %arg3: memref<1x136x32xf32, #tpu.memory_space<vmem>>, %arg4: memref<1x33x128xf32, #tpu.memory_space<vmem>>, %arg5: memref<1x33x128xf32, #tpu.memory_space<vmem>>) attributes {dimension_semantics = [#tpu.dimension_semantics<parallel>, #tpu.dimension_semantics<parallel>], iteration_bounds = array<i64: 2, 1>, scalar_prefetch = 0 : i64, scratch_operands = 0 : i64, tpu.core_type = #tpu.core_type<tc>, window_params = [{pipeline_mode = #tpu.pipeline_mode<synchronous>, transform_indices = @transform_0, window_bounds = array<i64: 2, 80, 32>}, {transform_indices = @transform_1, window_bounds = array<i64: 1, 136, 32>}, {transform_indices = @transform_2, window_bounds = array<i64: 1, 33, 128>}, {transform_indices = @transform_3, window_bounds = array<i64: 1, 33, 128>}]} {
    %c128_i32 = arith.constant 128 : i32
    %0 = arith.muli %arg1, %c128_i32 : i32
    %1 = tpu.assume_multiple %0, 128 : i32
    %c0_i32 = arith.constant 0 : i32
    %2 = arith.addi %1, %c0_i32 : i32
    %c0 = arith.constant 0 : index
    %3 = arith.index_cast %2 : i32 to index
    %c0_0 = arith.constant 0 : index
    %4 = vector.load %arg3[%c0, %3, %c0_0] : memref<1x136x32xf32, #tpu.memory_space<vmem>>, vector<1x128x32xf32>
    %5 = vector.shape_cast %4 : vector<1x128x32xf32> to vector<128x32xf32>
    %c0_1 = arith.constant 0 : index
    %c0_2 = arith.constant 0 : index
    %c0_3 = arith.constant 0 : index
    %6 = vector.load %arg2[%c0_1, %c0_2, %c0_3] : memref<2x80x32xf32, #tpu.memory_space<vmem>>, vector<1x80x32xf32>
    %7 = vector.shape_cast %6 : vector<1x80x32xf32> to vector<80x32xf32>
    %cst = arith.constant dense<0.000000e+00> : vector<80x128xf32>
    %8 = tpu.matmul %7, %5, %cst {dimension_numbers = #tpu.dot_dimension_numbers<[1], [1], [0], [0], [0, 0, 1, 0], [], []>} : vector<80x32xf32>, vector<128x32xf32>, vector<80x128xf32> -> vector<80x128xf32>
    %c1_i32 = arith.constant 1 : i32
    %9 = arith.addi %1, %c1_i32 : i32
    %c0_4 = arith.constant 0 : index
    %10 = arith.index_cast %9 : i32 to index
    %c0_5 = arith.constant 0 : index
    %11 = vector.load %arg3[%c0_4, %10, %c0_5] : memref<1x136x32xf32, #tpu.memory_space<vmem>>, vector<1x128x32xf32>
    %12 = vector.shape_cast %11 : vector<1x128x32xf32> to vector<128x32xf32>
    %c1 = arith.constant 1 : index
    %c0_6 = arith.constant 0 : index
    %c0_7 = arith.constant 0 : index
    %13 = vector.load %arg2[%c1, %c0_6, %c0_7] : memref<2x80x32xf32, #tpu.memory_space<vmem>>, vector<1x80x32xf32>
    %14 = vector.shape_cast %13 : vector<1x80x32xf32> to vector<80x32xf32>
    %cst_8 = arith.constant dense<0.000000e+00> : vector<80x128xf32>
    %15 = tpu.matmul %14, %12, %cst_8 {dimension_numbers = #tpu.dot_dimension_numbers<[1], [1], [0], [0], [0, 0, 1, 0], [], []>} : vector<80x32xf32>, vector<128x32xf32>, vector<80x128xf32> -> vector<80x128xf32>
    %16 = arith.addf %8, %15 : vector<80x128xf32>
    %17 = vector.extract_strided_slice %16 {offsets = [0, 0], sizes = [40, 128], strides = [1, 1]} : vector<80x128xf32> to vector<40x128xf32>
    %18 = vector.extract_strided_slice %16 {offsets = [40, 0], sizes = [40, 128], strides = [1, 1]} : vector<80x128xf32> to vector<40x128xf32>
    %19 = arith.mulf %17, %17 : vector<40x128xf32>
    %20 = arith.mulf %18, %18 : vector<40x128xf32>
    %21 = arith.addf %19, %20 : vector<40x128xf32>
    %22 = math.sqrt %21 : vector<40x128xf32>
    %23 = vector.extract_strided_slice %22 {offsets = [0, 0], sizes = [33, 128], strides = [1, 1]} : vector<40x128xf32> to vector<33x128xf32>
    %c0_9 = arith.constant 0 : index
    %c0_10 = arith.constant 0 : index
    %c0_11 = arith.constant 0 : index
    %24 = vector.load %arg4[%c0_9, %c0_10, %c0_11] : memref<1x33x128xf32, #tpu.memory_space<vmem>>, vector<1x33x128xf32>
    %25 = vector.shape_cast %24 : vector<1x33x128xf32> to vector<33x128xf32>
    %26 = vector.shape_cast %23 : vector<33x128xf32> to vector<1x33x128xf32>
    tpu.vector_store %arg4[%c0_9, %c0_10, %c0_11], %26 {strides = array<i32>} : memref<1x33x128xf32, #tpu.memory_space<vmem>>, vector<1x33x128xf32>,
    %27 = math.absf %17 : vector<40x128xf32>
    %28 = math.absf %18 : vector<40x128xf32>
    %29 = arith.maximumf %27, %28 : vector<40x128xf32>
    %30 = arith.minimumf %27, %28 : vector<40x128xf32>
    %cst_12 = arith.constant 0.000000e+00 : f32
    %31 = vector.broadcast %cst_12 : f32 to vector<40x128xf32>
    %32 = arith.cmpf ogt, %29, %31 : vector<40x128xf32>
    %cst_13 = arith.constant 1.000000e+00 : f32
    %33 = vector.broadcast %cst_13 : f32 to vector<40x128xf32>
    %34 = arith.select %32, %29, %33 : vector<40x128xi1>, vector<40x128xf32>
    %35 = arith.divf %30, %34 : vector<40x128xf32>
    %cst_14 = arith.constant 0.414213568 : f32
    %36 = vector.broadcast %cst_14 : f32 to vector<40x128xf32>
    %37 = arith.cmpf ogt, %35, %36 : vector<40x128xf32>
    %cst_15 = arith.constant 1.000000e+00 : f32
    %38 = vector.broadcast %cst_15 : f32 to vector<40x128xf32>
    %39 = arith.subf %35, %38 : vector<40x128xf32>
    %cst_16 = arith.constant 1.000000e+00 : f32
    %40 = vector.broadcast %cst_16 : f32 to vector<40x128xf32>
    %41 = arith.addf %35, %40 : vector<40x128xf32>
    %42 = arith.divf %39, %41 : vector<40x128xf32>
    %43 = arith.select %37, %42, %35 : vector<40x128xi1>, vector<40x128xf32>
    %44 = arith.mulf %43, %43 : vector<40x128xf32>
    %cst_17 = arith.constant 0.0805374458 : f32
    %45 = vector.broadcast %cst_17 : f32 to vector<40x128xf32>
    %46 = arith.mulf %45, %44 : vector<40x128xf32>
    %cst_18 = arith.constant 0.138776854 : f32
    %47 = vector.broadcast %cst_18 : f32 to vector<40x128xf32>
    %48 = arith.subf %46, %47 : vector<40x128xf32>
    %49 = arith.mulf %48, %44 : vector<40x128xf32>
    %cst_19 = arith.constant 0.199777111 : f32
    %50 = vector.broadcast %cst_19 : f32 to vector<40x128xf32>
    %51 = arith.addf %49, %50 : vector<40x128xf32>
    %52 = arith.mulf %51, %44 : vector<40x128xf32>
    %cst_20 = arith.constant 0.333329499 : f32
    %53 = vector.broadcast %cst_20 : f32 to vector<40x128xf32>
    %54 = arith.subf %52, %53 : vector<40x128xf32>
    %55 = arith.mulf %54, %44 : vector<40x128xf32>
    %56 = arith.mulf %55, %43 : vector<40x128xf32>
    %57 = arith.addf %56, %43 : vector<40x128xf32>
    %cst_21 = arith.constant 0.785398185 : f32
    %58 = vector.broadcast %cst_21 : f32 to vector<40x128xf32>
    %59 = arith.addf %57, %58 : vector<40x128xf32>
    %60 = arith.select %37, %59, %57 : vector<40x128xi1>, vector<40x128xf32>
    %61 = arith.cmpf ogt, %28, %27 : vector<40x128xf32>
    %cst_22 = arith.constant 1.57079637 : f32
    %62 = vector.broadcast %cst_22 : f32 to vector<40x128xf32>
    %63 = arith.subf %62, %60 : vector<40x128xf32>
    %64 = arith.select %61, %63, %60 : vector<40x128xi1>, vector<40x128xf32>
    %cst_23 = arith.constant 0.000000e+00 : f32
    %65 = vector.broadcast %cst_23 : f32 to vector<40x128xf32>
    %66 = arith.cmpf olt, %17, %65 : vector<40x128xf32>
    %cst_24 = arith.constant 3.14159274 : f32
    %67 = vector.broadcast %cst_24 : f32 to vector<40x128xf32>
    %68 = arith.subf %67, %64 : vector<40x128xf32>
    %69 = arith.select %66, %68, %64 : vector<40x128xi1>, vector<40x128xf32>
    %cst_25 = arith.constant 0.000000e+00 : f32
    %70 = vector.broadcast %cst_25 : f32 to vector<40x128xf32>
    %71 = arith.cmpf olt, %18, %70 : vector<40x128xf32>
    %cst_26 = arith.constant 0.000000e+00 : f32
    %72 = vector.broadcast %cst_26 : f32 to vector<40x128xf32>
    %73 = arith.subf %72, %69 : vector<40x128xf32>
    %74 = arith.select %71, %73, %69 : vector<40x128xi1>, vector<40x128xf32>
    %75 = vector.extract_strided_slice %74 {offsets = [0, 0], sizes = [33, 128], strides = [1, 1]} : vector<40x128xf32> to vector<33x128xf32>
    %c0_27 = arith.constant 0 : index
    %c0_28 = arith.constant 0 : index
    %c0_29 = arith.constant 0 : index
    %76 = vector.load %arg5[%c0_27, %c0_28, %c0_29] : memref<1x33x128xf32, #tpu.memory_space<vmem>>, vector<1x33x128xf32>
    %77 = vector.shape_cast %76 : vector<1x33x128xf32> to vector<33x128xf32>
    %78 = vector.shape_cast %75 : vector<33x128xf32> to vector<1x33x128xf32>
    tpu.vector_store %arg5[%c0_27, %c0_28, %c0_29], %78 {strides = array<i32>} : memref<1x33x128xf32, #tpu.memory_space<vmem>>, vector<1x33x128xf32>,
    return
  }
  func.func @transform_0(%arg0: i32, %arg1: i32) -> (i32, i32, i32) {
    %c0_i32 = arith.constant 0 : i32
    %c0_i32_0 = arith.constant 0 : i32
    %c0_i32_1 = arith.constant 0 : i32
    %c0_i32_2 = arith.constant 0 : i32
    return %c0_i32, %c0_i32_0, %c0_i32_1 : i32, i32, i32
  }
  func.func @transform_1(%arg0: i32, %arg1: i32) -> (i32, i32, i32) {
    %c0_i32 = arith.constant 0 : i32
    %c0_i32_0 = arith.constant 0 : i32
    %c0_i32_1 = arith.constant 0 : i32
    return %arg0, %c0_i32, %c0_i32_0 : i32, i32, i32
  }
  func.func @transform_2(%arg0: i32, %arg1: i32) -> (i32, i32, i32) {
    %c0_i32 = arith.constant 0 : i32
    %c0_i32_0 = arith.constant 0 : i32
    return %arg0, %c0_i32, %arg1 : i32, i32, i32
  }
  func.func @transform_3(%arg0: i32, %arg1: i32) -> (i32, i32, i32) {
    %c0_i32 = arith.constant 0 : i32
    %c0_i32_0 = arith.constant 0 : i32
    return %arg0, %c0_i32, %arg1 : i32, i32, i32
  }
}

</mosaic_0001>

<bundles_post_ra>
// kernel: stft_forward.1
= control target key start
LH: loop header
LB: loop body
LE: loop exit
PB: predicated region body
PF: predicated region fallthrough
CT: control target
= control target key end

     0   :  { %s1369_s12 = smov 0   ;;  %s1371_s13 = smov 0   ;;  %s1820_s0 = inlined_call_operand.vmem [shape: f32[2,80,32], index: 0, kind: input, shape index: {}]   ;;  %s1821_s1 = inlined_call_operand.vmem [shape: f32[2,136,32], index: 1, kind: input, shape index: {}]   ;;  %s1822_s2 = inlined_call_operand.vmem [shape: f32[2,33,128], index: 2, kind: output, shape index: {0}]   ;;  %s1823_s3 = inlined_call_operand.vmem [shape: f32[2,33,128], index: 3, kind: output, shape index: {1}]  }
   0x1   :  { %s1373_s14 = smov 0  }
   0x2 LB: > { %s26_s15 = sadd.s32 1, %s1343_s13  ;;  %p1024_p0 = scmp.ge.s32.totalorder %s1347_s14, 1  ;;  %s1347_s14 = sphi %s1373_s14, %s14_s14   ;;  %s1343_s13 = sphi %s1371_s13, %s1825_s13   ;;  %s1339_s12 = sphi %s1369_s12, %s1824_s12  }
   0x3   : > { %p28_p1 = scmp.ge.s32.totalorder %s26_s15, 2  ;;  %p156_p2 = scmp.lt.s32.totalorder %s1347_s14, 3 }
   0x5   : > { %s1827_s15 = smov (%p28_p1, %s26_s15), 0  ;;  %p157_p3 = pnand %p1024_p0, %p156_p2 }
   0x6   : > { %p191_p4 = scmp.lt.s32.totalorder (!%p157_p3), %s1339_s12, 1 }
   0x7   : > { %160 = sbr.rel (%p157_p3) target bundleno = 378 (0x17a), region = 28 }
   0xc   : > { %vm269_vm0 = vcmask 261120   ;;  %v1044_v0 = vld [vmem:[%s1820_s0 + $0x50] sm:$0xff]  ;;  %v230_v1 = vld [vmem:[%s1820_s0] sm:$0xff]  ;;  %s1829_s12 = smov (!%p191_p4, %s1339_s12), 1  ;;  %v1045_v34 = vld [vmem:[%s1820_s0 + $0x58] sm:$0xff] }
   0xd   : > { %1207 = vmatprep.mubr.msk.f32.mxu0 %vm269_vm0, %v1044_v0  ;;  %1254 = vmatprep.mubr.msk.f32.mxu1 %vm269_vm0, %v230_v1  ;;  %s1269_s20 = smul.u32 136, %s1829_s12  ;;  %v231_v35 = vld [vmem:[%s1820_s0 + $0x8] sm:$0xff]  ;;  %v1046_v36 = vld [vmem:[%s1820_s0 + $0x60] sm:$0xff]  ;;  %v232_v37 = vld [vmem:[%s1820_s0 + $0x10] sm:$0xff] }
   0xe   : > { %v1047_v38 = vld [vmem:[%s1820_s0 + $0x68] sm:$0xff]  ;;  %v233_v39 = vld [vmem:[%s1820_s0 + $0x18] sm:$0xff]  ;;  %v1048_v40 = vld [vmem:[%s1820_s0 + $0x70] sm:$0xff]  ;;  %s1270_s10 = smul.u32 40, %s1829_s12 }
   0xf   : > { %s1401_s23 = scalar_lea.vmem %s1821_s1, %s1269_s20  ;;  %v234_v41 = vld [vmem:[%s1820_s0 + $0x20] sm:$0xff]  ;;  %v1049_v42 = vld [vmem:[%s1820_s0 + $0x78] sm:$0xff]  ;;  %v235_v43 = vld [vmem:[%s1820_s0 + $0x28] sm:$0xff] }
  0x10   : > { %v1043_v2 = vld [vmem:[%s1401_s23 + $0x79] sm:$0xff]  ;;  %v1042_v4 = vld [vmem:[%s1401_s23 + $0x71] sm:$0xff]  ;;  %v1041_v6 = vld [vmem:[%s1401_s23 + $0x69] sm:$0xff]  ;;  %s1676_s17 = scalar_lea.vmem %s1822_s2, %s1270_s10  ;;  %s1777_s20 = scalar_lea.vmem %s1823_s3, %s1270_s10 }
  0x11   : > { %v229_v3 = vld [vmem:[%s1401_s23 + $0x78] sm:$0xff]  ;;  %1175 = vmatprep.subr.msk.mxu0 %vm269_vm0, %v1043_v2  ;;  %v228_v5 = vld [vmem:[%s1401_s23 + $0x70] sm:$0xff]  ;;  %v227_v7 = vld [vmem:[%s1401_s23 + $0x68] sm:$0xff] }
  0x12   : > { %1222 = vmatprep.subr.msk.mxu1 %vm269_vm0, %v229_v3  ;;  %1176 = vmatpush3.xpose.msk.msra.mxu0 %vm269_vm0, %v1043_v2  ;;  %v1040_v8 = vld [vmem:[%s1401_s23 + $0x61] sm:$0xff]  ;;  %v1039_v10 = vld [vmem:[%s1401_s23 + $0x59] sm:$0xff]  ;;  %v1038_v12 = vld [vmem:[%s1401_s23 + $0x51] sm:$0xff] }
  0x13   : > { %1223 = vmatpush3.xpose.msk.msra.mxu1 %vm269_vm0, %v229_v3  ;;  %1177 = vmatprep.subr.msk.mxu0 %vm269_vm0, %v1042_v4  ;;  %v226_v9 = vld [vmem:[%s1401_s23 + $0x60] sm:$0xff]  ;;  %v225_v11 = vld [vmem:[%s1401_s23 + $0x58] sm:$0xff]  ;;  %v224_v13 = vld [vmem:[%s1401_s23 + $0x50] sm:$0xff] }
  0x14   : > { %1224 = vmatprep.subr.msk.mxu1 %vm269_vm0, %v228_v5  ;;  %v1037_v14 = vld [vmem:[%s1401_s23 + $0x49] sm:$0xff]  ;;  %v1036_v16 = vld [vmem:[%s1401_s23 + $0x41] sm:$0xff]  ;;  %v1035_v18 = vld [vmem:[%s1401_s23 + $0x39] sm:$0xff] }
  0x15   : > { %v223_v15 = vld [vmem:[%s1401_s23 + $0x48] sm:$0xff]  ;;  %v222_v17 = vld [vmem:[%s1401_s23 + $0x40] sm:$0xff]  ;;  %v221_v19 = vld [vmem:[%s1401_s23 + $0x38] sm:$0xff] }
  0x16   : > { %1178 = vmatpush3.xpose.msk.msra.mxu0 %vm269_vm0, %v1042_v4  ;;  %v1034_v20 = vld [vmem:[%s1401_s23 + $0x31] sm:$0xff]  ;;  %v1033_v22 = vld [vmem:[%s1401_s23 + $0x29] sm:$0xff]  ;;  %v1032_v24 = vld [vmem:[%s1401_s23 + $0x21] sm:$0xff] }
  0x17   : > { %1225 = vmatpush3.xpose.msk.msra.mxu1 %vm269_vm0, %v228_v5  ;;  %1179 = vmatprep.subr.msk.mxu0 %vm269_vm0, %v1041_v6  ;;  %v220_v21 = vld [vmem:[%s1401_s23 + $0x30] sm:$0xff]  ;;  %v219_v23 = vld [vmem:[%s1401_s23 + $0x28] sm:$0xff]  ;;  %v218_v25 = vld [vmem:[%s1401_s23 + $0x20] sm:$0xff] }
  0x18   : > { %1226 = vmatprep.subr.msk.mxu1 %vm269_vm0, %v227_v7  ;;  %v1031_v26 = vld [vmem:[%s1401_s23 + $0x19] sm:$0xff]  ;;  %v1030_v28 = vld [vmem:[%s1401_s23 + $0x11] sm:$0xff]  ;;  %v1029_v30 = vld [vmem:[%s1401_s23 + $0x9] sm:$0xff] }
  0x19   : > { %v217_v27 = vld [vmem:[%s1401_s23 + $0x18] sm:$0xff]  ;;  %v216_v29 = vld [vmem:[%s1401_s23 + $0x10] sm:$0xff]  ;;  %v215_v31 = vld [vmem:[%s1401_s23 + $0x8] sm:$0xff] }
  0x1a   : > { %1180 = vmatpush3.xpose.msk.msra.mxu0 %vm269_vm0, %v1041_v6  ;;  %v1028_v32 = vld [vmem:[%s1401_s23 + $0x1] sm:$0xff]  ;;  %v236_v45 = vld [vmem:[%s1820_s0 + $0x30] sm:$0xff]  ;;  %v237_v47 = vld [vmem:[%s1820_s0 + $0x38] sm:$0xff] }
  0x1b   : > { %1227 = vmatpush3.xpose.msk.msra.mxu1 %vm269_vm0, %v227_v7  ;;  %1181 = vmatprep.subr.msk.mxu0 %vm269_vm0, %v1040_v8  ;;  %v214_v33 = vld [vmem:[%s1401_s23] sm:$0xff]  ;;  %v1051_v46 = vld [vmem:[%s1820_s0 + $0x88] sm:$0xff]  ;;  %v1052_v48 = vld [vmem:[%s1820_s0 + $0x90] sm:$0xff] }
  0x1c   : > { %1228 = vmatprep.subr.msk.mxu1 %vm269_vm0, %v226_v9  ;;  %v1050_v44 = vld [vmem:[%s1820_s0 + $0x80] sm:$0xff]  ;;  %v1053_v50 = vld [vmem:[%s1820_s0 + $0x98] sm:$0xff]  ;;  %v239_v51 = vld [vmem:[%s1820_s0 + $0x48] sm:$0xff] }
  0x1d   : > { %v238_v49 = vld [vmem:[%s1820_s0 + $0x40] sm:$0xff] }
  0x1e   : > { %1182 = vmatpush3.xpose.msk.msra.mxu0 %vm269_vm0, %v1040_v8 }
  0x1f   : > { %1229 = vmatpush3.xpose.msk.msra.mxu1 %vm269_vm0, %v226_v9  ;;  %1183 = vmatprep.subr.msk.mxu0 %vm269_vm0, %v1039_v10 }
  0x20   : > { %1230 = vmatprep.subr.msk.mxu1 %vm269_vm0, %v225_v11 }
  0x22   : > { %1184 = vmatpush3.xpose.msk.msra.mxu0 %vm269_vm0, %v1039_v10 }
  0x23   : > { %1231 = vmatpush3.xpose.msk.msra.mxu1 %vm269_vm0, %v225_v11  ;;  %1185 = vmatprep.subr.msk.mxu0 %vm269_vm0, %v1038_v12 }
  0x24   : > { %1232 = vmatprep.subr.msk.mxu1 %vm269_vm0, %v224_v13 }
  0x26   : > { %1186 = vmatpush3.xpose.msk.msra.mxu0 %vm269_vm0, %v1038_v12 }
  0x27   : > { %1233 = vmatpush3.xpose.msk.msra.mxu1 %vm269_vm0, %v224_v13  ;;  %1187 = vmatprep.subr.msk.mxu0 %vm269_vm0, %v1037_v14 }
  0x28   : > { %1234 = vmatprep.subr.msk.mxu1 %vm269_vm0, %v223_v15 }
  0x2a   : > { %1188 = vmatpush3.xpose.msk.msra.mxu0 %vm269_vm0, %v1037_v14 }
  0x2b   : > { %1235 = vmatpush3.xpose.msk.msra.mxu1 %vm269_vm0, %v223_v15  ;;  %1189 = vmatprep.subr.msk.mxu0 %vm269_vm0, %v1036_v16 }
  0x2c   : > { %1236 = vmatprep.subr.msk.mxu1 %vm269_vm0, %v222_v17 }
  0x2e   : > { %1190 = vmatpush3.xpose.msk.msra.mxu0 %vm269_vm0, %v1036_v16 }
  0x2f   : > { %1237 = vmatpush3.xpose.msk.msra.mxu1 %vm269_vm0, %v222_v17  ;;  %1191 = vmatprep.subr.msk.mxu0 %vm269_vm0, %v1035_v18 }
  0x30   : > { %1238 = vmatprep.subr.msk.mxu1 %vm269_vm0, %v221_v19 }
  0x32   : > { %1192 = vmatpush3.xpose.msk.msra.mxu0 %vm269_vm0, %v1035_v18 }
  0x33   : > { %1239 = vmatpush3.xpose.msk.msra.mxu1 %vm269_vm0, %v221_v19  ;;  %1193 = vmatprep.subr.msk.mxu0 %vm269_vm0, %v1034_v20 }
  0x34   : > { %1240 = vmatprep.subr.msk.mxu1 %vm269_vm0, %v220_v21 }
  0x36   : > { %1194 = vmatpush3.xpose.msk.msra.mxu0 %vm269_vm0, %v1034_v20 }
  0x37   : > { %1241 = vmatpush3.xpose.msk.msra.mxu1 %vm269_vm0, %v220_v21  ;;  %1195 = vmatprep.subr.msk.mxu0 %vm269_vm0, %v1033_v22 }
  0x38   : > { %1242 = vmatprep.subr.msk.mxu1 %vm269_vm0, %v219_v23 }
  0x3a   : > { %1196 = vmatpush3.xpose.msk.msra.mxu0 %vm269_vm0, %v1033_v22 }
  0x3b   : > { %1243 = vmatpush3.xpose.msk.msra.mxu1 %vm269_vm0, %v219_v23  ;;  %1197 = vmatprep.subr.msk.mxu0 %vm269_vm0, %v1032_v24 }
  0x3c   : > { %1244 = vmatprep.subr.msk.mxu1 %vm269_vm0, %v218_v25 }
  0x3e   : > { %1198 = vmatpush3.xpose.msk.msra.mxu0 %vm269_vm0, %v1032_v24 }
  0x3f   : > { %1245 = vmatpush3.xpose.msk.msra.mxu1 %vm269_vm0, %v218_v25  ;;  %1199 = vmatprep.subr.msk.mxu0 %vm269_vm0, %v1031_v26 }
  0x40   : > { %1246 = vmatprep.subr.msk.mxu1 %vm269_vm0, %v217_v27 }
  0x42   : > { %1200 = vmatpush3.xpose.msk.msra.mxu0 %vm269_vm0, %v1031_v26 }
  0x43   : > { %1247 = vmatpush3.xpose.msk.msra.mxu1 %vm269_vm0, %v217_v27  ;;  %1201 = vmatprep.subr.msk.mxu0 %vm269_vm0, %v1030_v28 }
  0x44   : > { %1248 = vmatprep.subr.msk.mxu1 %vm269_vm0, %v216_v29 }
  0x46   : > { %1202 = vmatpush3.xpose.msk.msra.mxu0 %vm269_vm0, %v1030_v28 }
  0x47   : > { %1249 = vmatpush3.xpose.msk.msra.mxu1 %vm269_vm0, %v216_v29  ;;  %1203 = vmatprep.subr.msk.mxu0 %vm269_vm0, %v1029_v30 }
  0x48   : > { %1250 = vmatprep.subr.msk.mxu1 %vm269_vm0, %v215_v31 }
  0x4a   : > { %1204 = vmatpush3.xpose.msk.msra.mxu0 %vm269_vm0, %v1029_v30 }
  0x4b   : > { %1251 = vmatpush3.xpose.msk.msra.mxu1 %vm269_vm0, %v215_v31  ;;  %1205 = vmatprep.subr.msk.mxu0 %vm269_vm0, %v1028_v32 }
  0x4c   : > { %1252 = vmatprep.subr.msk.mxu1 %vm269_vm0, %v214_v33 }
  0x4e   : > { %1206 = vmatpush3.xpose.msk.msra.mxu0 %vm269_vm0, %v1028_v32 }
  0x4f   : > { %1253 = vmatpush3.xpose.msk.msra.mxu1 %vm269_vm0, %v214_v33 }
  0x51   : > { %1208 = vmatmul.mubr.msk.f32.vlgmr.msra.gmra.mxu0 %vm269_vm0, %v1045_v34 }
  0x52   : > { %1255 = vmatmul.mubr.msk.f32.vlgmr.msra.gmra.mxu1 %vm269_vm0, %v231_v35  ;;  %1210 = vmatprep.mubr.msk.f32.mxu0 %vm269_vm0, %v1046_v36 }
  0x53   : > { %1257 = vmatprep.mubr.msk.f32.mxu1 %vm269_vm0, %v232_v37 }
  0x55   : > { %1211 = vmatmul.mubr.msk.f32.gmra.mxu0 %vm269_vm0, %v1047_v38 }
  0x56   : > { %1258 = vmatmul.mubr.msk.f32.gmra.mxu1 %vm269_vm0, %v233_v39  ;;  %1213 = vmatprep.mubr.msk.f32.mxu0 %vm269_vm0, %v1048_v40 }
  0x57   : > { %1260 = vmatprep.mubr.msk.f32.mxu1 %vm269_vm0, %v234_v41 }
  0x59   : > { %1214 = vmatmul.mubr.msk.f32.gmra.mxu0 %vm269_vm0, %v1049_v42 }
  0x5a   : > { %1261 = vmatmul.mubr.msk.f32.gmra.mxu1 %vm269_vm0, %v235_v43  ;;  %1216 = vmatprep.mubr.msk.f32.mxu0 %vm269_vm0, %v1050_v44 }
  0x5b   : > { %1263 = vmatprep.mubr.msk.f32.mxu1 %vm269_vm0, %v236_v45 }
  0x5d   : > { %1217 = vmatmul.mubr.msk.f32.gmra.mxu0 %vm269_vm0, %v1051_v46 }
  0x5e   : > { %1264 = vmatmul.mubr.msk.f32.gmra.mxu1 %vm269_vm0, %v237_v47  ;;  %1219 = vmatprep.mubr.msk.f32.mxu0 %vm269_vm0, %v1052_v48 }
  0x5f   : > { %1266 = vmatprep.mubr.msk.f32.mxu1 %vm269_vm0, %v238_v49 }
  0x61   : > { %1220 = vmatmul.mubr.msk.f32.gmra.mxu0 %vm269_vm0, %v1053_v50 }
  0x62   : > { %1267 = vmatmul.mubr.msk.f32.gmra.mxu1 %vm269_vm0, %v239_v51 }
 0x111   : > { %v1209_v52 = vpop.f32.mrf.mxu0 }
 0x112   : > { %v1256_v53 = vpop.f32.mrf.mxu1 }
 0x113   : > { %v414_v54 = vpop.f32.mrf.mxu0  ;;  %v1587_v9 = vadd.f32 %v1256_v53, %v1209_v52 }
 0x114   : > { %v607_v55 = vpop.f32.mrf.mxu1 }
 0x115   : > { %v1212_v56 = vpop.f32.mrf.mxu0  ;;  %v1571_v58 = vadd.f32 %v607_v55, %v414_v54  ;;  %v657_v22 = vmul.f32 %v1587_v9, %v1587_v9  ;;  %v1621_v28 = vand.u32 2147483647, %v1587_v9 }
 0x116   : > { %v1259_v57 = vpop.f32.mrf.mxu1 }
 0x117   : > { %v424_v59 = vpop.f32.mrf.mxu0  ;;  %v656_v0 = vmul.f32 %v1571_v58, %v1571_v58  ;;  %v1578_v3 = vand.u32 2147483647, %v1571_v58  ;;  %v1647_v38 = vadd.f32 %v1259_v57, %v1212_v56 }
 0x118   : > { %v617_v60 = vpop.f32.mrf.mxu1 }
 0x119   : > { %v1215_v61 = vpop.f32.mrf.mxu0  ;;  %v1580_v4 = vadd.f32 %v617_v60, %v424_v59  ;;  %v659_v46 = vmul.f32 %v1647_v38, %v1647_v38  ;;  %v1663_v47 = vand.u32 2147483647, %v1647_v38 }
 0x11a   : > { %v1262_v62 = vpop.f32.mrf.mxu1 }
 0x11b   : > { %v1573_v63 = vadd.f32 %v1262_v62, %v1215_v61  ;;  %v434_v1 = vpop.f32.mrf.mxu0  ;;  %v658_v15 = vmul.f32 %v1580_v4, %v1580_v4  ;;  %v1600_v16 = vand.u32 2147483647, %v1580_v4 }
 0x11c   : > { %v627_v2 = vpop.f32.mrf.mxu1 }
 0x11d   : > { %v661_v5 = vmul.f32 %v1573_v63, %v1573_v63  ;;  %v1585_v6 = vand.u32 2147483647, %v1573_v63  ;;  %v1218_v7 = vpop.f32.mrf.mxu0  ;;  %v1603_v17 = vadd.f32 %v627_v2, %v434_v1 }
 0x11e   : > { %v1265_v8 = vpop.f32.mrf.mxu1 }
 0x11f   : > { %v1589_v10 = vadd.f32 %v661_v5, %v656_v0  ;;  %v721_v11 = vmax.f32 %v1578_v3, %v1585_v6  ;;  %vm841_vm1 = vcmp.gt.f32.partialorder %v1585_v6, %v1578_v3  ;;  %v1595_v12 = vadd.f32 %v1265_v8, %v1218_v7  ;;  %v444_v13 = vpop.f32.mrf.mxu0 }
 0x120   : > { %v637_v14 = vpop.f32.mrf.mxu1  ;;  %v660_v31 = vmul.f32 %v1603_v17, %v1603_v17  ;;  %v1634_v32 = vand.u32 2147483647, %v1603_v17  ;;  %v726_v53 = vmin.f32 %v1578_v3, %v1585_v6 }
 0x121   : > { %1295 = vrsqrt.f32 %v1589_v10  ;;  %vm731_vm2 = vcmp.gt.f32.partialorder %v721_v11, 0.0  ;;  %v663_v18 = vmul.f32 %v1595_v12, %v1595_v12  ;;  %v1608_v19 = vand.u32 2147483647, %v1595_v12  ;;  %v1221_v20 = vpop.f32.mrf.mxu0 }
 0x122   : > { %v1268_v21 = vpop.f32.mrf.mxu1  ;;  %v736_v23 = vsel %vm731_vm2, %v721_v11, 1.0  ;;  %v1612_v24 = vadd.f32 %v637_v14, %v444_v13  ;;  %vm673_vm9 = vcmp.eq.f32.partialorder %v1589_v10, inf  ;;  %v676_v52 = vand.u32 2147483648, %v1589_v10 }
 0x123   : > { %1297 = vrcp.f32 %v736_v23  ;;  %v1614_v25 = vadd.f32 %v663_v18, %v658_v15  ;;  %v723_v26 = vmax.f32 %v1600_v16, %v1608_v19  ;;  %v1618_v27 = vadd.f32 %v1268_v21, %v1221_v20  ;;  %v454_v41 = vpop.f32.mrf.mxu0 }
 0x124   : > { %vm843_vm3 = vcmp.gt.f32.partialorder %v1608_v19, %v1600_v16  ;;  %v662_v29 = vmul.f32 %v1612_v24, %v1612_v24  ;;  %v1628_v30 = vand.u32 2147483647, %v1612_v24  ;;  %v647_v42 = vpop.f32.mrf.mxu1  ;;  %vm675_vm10 = vcmp.eq.f32.partialorder %v1589_v10, 0.0 }
 0x125   : > { %1299 = vrsqrt.f32 %v1614_v25  ;;  %vm733_vm4 = vcmp.gt.f32.partialorder %v723_v26, 0.0  ;;  %v665_v36 = vmul.f32 %v1618_v27, %v1618_v27  ;;  %v1645_v37 = vand.u32 2147483647, %v1618_v27 }
 0x126   : > { %v1636_v33 = vadd.f32 %v662_v29, %v657_v22  ;;  %v722_v34 = vmax.f32 %v1621_v28, %v1628_v30  ;;  %v738_v35 = vsel %vm733_vm4, %v723_v26, 1.0  ;;  %vm842_vm5 = vcmp.gt.f32.partialorder %v1628_v30, %v1621_v28 }
 0x127   : > { %1301 = vrcp.f32 %v738_v35  ;;  %v1650_v39 = vadd.f32 %v665_v36, %v660_v31  ;;  %v725_v40 = vmax.f32 %v1634_v32, %v1645_v37  ;;  %vm845_vm7 = vcmp.gt.f32.partialorder %v1645_v37, %v1634_v32 }
 0x128   : > { %1303 = vrsqrt.f32 %v1636_v33  ;;  %vm732_vm6 = vcmp.gt.f32.partialorder %v722_v34, 0.0  ;;  %v1658_v44 = vadd.f32 %v647_v42, %v454_v41  ;;  %vm687_vm12 = vcmp.eq.f32.partialorder %v1614_v25, inf }
 0x129   : > { %v737_v43 = vsel %vm732_vm6, %v722_v34, 1.0  ;;  %vm735_vm8 = vcmp.gt.f32.partialorder %v725_v40, 0.0  ;;  %v690_v1 = vand.u32 2147483648, %v1614_v25  ;;  %v728_v2 = vmin.f32 %v1600_v16, %v1608_v19 }
 0x12a   : > { %1305 = vrcp.f32 %v737_v43  ;;  %v740_v48 = vsel %vm735_vm8, %v725_v40, 1.0  ;;  %v664_v50 = vmul.f32 %v1658_v44, %v1658_v44  ;;  %v1669_v51 = vand.u32 2147483647, %v1658_v44 }
 0x12b   : > { %1307 = vrsqrt.f32 %v1650_v39  ;;  %vm689_vm14 = vcmp.eq.f32.partialorder %v1614_v25, 0.0  ;;  %v727_v15 = vmin.f32 %v1621_v28, %v1628_v30  ;;  %vm680_vm15 = vcmp.eq.f32.partialorder %v1636_v33, inf }
 0x12c   : > { %1309 = vrcp.f32 %v740_v48  ;;  %v1684_v56 = vadd.f32 %v664_v50, %v659_v46  ;;  %v724_v57 = vmax.f32 %v1663_v47, %v1669_v51  ;;  %vm844_vm11 = vcmp.gt.f32.partialorder %v1669_v51, %v1663_v47 }
 0x12d   : > { %v683_v21 = vand.u32 2147483648, %v1636_v33  ;;  %vm682_vm0 = vcmp.eq.f32.partialorder %v1636_v33, 0.0  ;;  %v730_v31 = vmin.f32 %v1634_v32, %v1645_v37  ;;  %vm701_vm2 = vcmp.eq.f32.partialorder %v1650_v39, inf }
 0x12e   : > { %v1296_v45 = vpop.eup %1295  ;;  %1311 = vrsqrt.f32 %v1684_v56  ;;  %vm734_vm13 = vcmp.gt.f32.partialorder %v724_v57, 0.0  ;;  %v704_v36 = vand.u32 2147483648, %v1650_v39  ;;  %vm703_vm4 = vcmp.eq.f32.partialorder %v1650_v39, 0.0 }
 0x12f   : > { %v672_v49 = vmul.f32 %v1296_v45, %v1589_v10  ;;  %v739_v8 = vsel %vm734_vm13, %v724_v57, 1.0  ;;  %vm694_vm6 = vcmp.eq.f32.partialorder %v1684_v56, inf  ;;  %v697_v48 = vand.u32 2147483648, %v1684_v56 }
 0x130   : > { %v1298_v54 = vpop.eup %1297  ;;  %vm696_vm8 = vcmp.eq.f32.partialorder %v1684_v56, 0.0  ;;  %v729_v50 = vmin.f32 %v1663_v47, %v1669_v51 }
 0x131   : > { %v674_v55 = vsel %vm673_vm9, %v1589_v10, %v672_v49  ;;  %v1688_v60 = vmul.f32 %v1298_v54, %v726_v53 }
 0x132   : > { %v677_v59 = vsel %vm675_vm10, %v676_v52, %v674_v55  ;;  %v1300_v61 = vpop.eup %1299 }
 0x133   : > { %706 = vst [vmem:[%s1676_s17] sm:$0xff] %v677_v59  ;;  %v761_v62 = vadd.f32 1.0, %v1688_v60  ;;  %v686_v0 = vmul.f32 %v1300_v61, %v1614_v25  ;;  %v1106_v46 = vadd.f32 -1.0, %v1688_v60  ;;  %vm751_vm9 = vcmp.gt.f32.partialorder %v1688_v60, 0.41421357 }
 0x134   : > { %v1302_v5 = vpop.eup %1301 }
 0x135   : > { %1313 = vrcp.f32 %v761_v62  ;;  %v688_v7 = vsel %vm687_vm12, %v1614_v25, %v686_v0  ;;  %v1304_v10 = vpop.eup %1303  ;;  %v1702_v13 = vmul.f32 %v1302_v5, %v728_v2 }
 0x136   : > { %v691_v11 = vsel %vm689_vm14, %v690_v1, %v688_v7  ;;  %1315 = vrcp.f32 %v739_v8  ;;  %v679_v14 = vmul.f32 %v1304_v10, %v1636_v33 }
 0x137   : > { %708 = vst [vmem:[%s1676_s17 + $0x10] sm:$0xff] %v691_v11  ;;  %v1306_v18 = vpop.eup %1305  ;;  %v763_v20 = vadd.f32 1.0, %v1702_v13  ;;  %v1108_v61 = vadd.f32 -1.0, %v1702_v13  ;;  %vm753_vm10 = vcmp.gt.f32.partialorder %v1702_v13, 0.41421357 }
 0x138   : > { %v1308_v22 = vpop.eup %1307  ;;  %v681_v23 = vsel %vm680_vm15, %v1636_v33, %v679_v14  ;;  %v1713_v25 = vmul.f32 %v1306_v18, %v727_v15  ;;  %vm856_vm15 = vcmp.lt.f32.partialorder %v1571_v58, 0.0 }
 0x139   : > { %1317 = vrcp.f32 %v763_v20  ;;  %v684_v26 = vsel %vm682_vm0, %v683_v21, %v681_v23  ;;  %v700_v29 = vmul.f32 %v1308_v22, %v1650_v39  ;;  %v1310_v34 = vpop.eup %1309  ;;  %vm858_vm0 = vcmp.lt.f32.partialorder %v1580_v4, 0.0 }
 0x13a   : > { %707 = vst [vmem:[%s1676_s17 + $0x8] sm:$0xff] %v684_v26  ;;  %v762_v35 = vadd.f32 1.0, %v1713_v25  ;;  %v1724_v40 = vmul.f32 %v1310_v34, %v730_v31  ;;  %v1107_v2 = vadd.f32 -1.0, %v1713_v25  ;;  %vm752_vm12 = vcmp.gt.f32.partialorder %v1713_v25, 0.41421357 }
 0x13b   : > { %v702_v33 = vsel %vm701_vm2, %v1650_v39, %v700_v29  ;;  %v1312_v43 = vpop.eup %1311  ;;  %vm873_vm2 = vcmp.lt.f32.partialorder %v1595_v12, 0.0 }
 0x13c   : > { %1319 = vrcp.f32 %v762_v35  ;;  %v705_v41 = vsel %vm703_vm4, %v704_v36, %v702_v33  ;;  %v765_v42 = vadd.f32 1.0, %v1724_v40  ;;  %v693_v45 = vmul.f32 %v1312_v43, %v1684_v56 }
 0x13d   : > { %710 = vst [vmem:[%s1676_s17 + $0x20] sm:$0x1] %v705_v41  ;;  %v1110_v15 = vadd.f32 -1.0, %v1724_v40  ;;  %vm755_vm13 = vcmp.gt.f32.partialorder %v1724_v40, 0.41421357  ;;  %vm872_vm4 = vcmp.lt.f32.partialorder %v1612_v24, 0.0 }
 0x13e   : > { %1321 = vrcp.f32 %v765_v42  ;;  %v695_v39 = vsel %vm694_vm6, %v1684_v56, %v693_v45  ;;  %vm875_vm6 = vcmp.lt.f32.partialorder %v1618_v27, 0.0 }
 0x13f   : > { %v698_v54 = vsel %vm696_vm8, %v697_v48, %v695_v39  ;;  %vm874_vm8 = vcmp.lt.f32.partialorder %v1658_v44, 0.0 }
 0x140   : > { %709 = vst [vmem:[%s1676_s17 + $0x18] sm:$0xff] %v698_v54 }
 0x142   : > { %v1314_v49 = vpop.eup %1313 }
 0x143   : > { %v1316_v52 = vpop.eup %1315  ;;  %v767_v53 = vmul.f32 %v1314_v49, %v1106_v46 }
 0x144   : > { %v1738_v55 = vmul.f32 %v1316_v52, %v729_v50 }
 0x145   : > { %v776_v57 = vsel %vm751_vm9, %v767_v53, %v1688_v60 }
 0x146   : > { %v781_v59 = vmul.f32 %v776_v57, %v776_v57  ;;  %v764_v56 = vadd.f32 1.0, %v1738_v55  ;;  %v1318_v62 = vpop.eup %1317  ;;  %v1109_v49 = vadd.f32 -1.0, %v1738_v55  ;;  %vm754_vm14 = vcmp.gt.f32.partialorder %v1738_v55, 0.41421357 }
 0x147   : > { %v771_v1 = vmul.f32 %v1318_v62, %v1108_v61 }
 0x148   : > { %v786_v0 = vmul.f32 0.080537446, %v781_v59  ;;  %1323 = vrcp.f32 %v764_v56 }
 0x149   : > { %v1320_v5 = vpop.eup %1319  ;;  %v778_v8 = vsel %vm753_vm10, %v771_v1, %v1702_v13 }
 0x14a   : > { %v1111_v7 = vadd.f32 -0.13877685, %v786_v0  ;;  %v783_v10 = vmul.f32 %v778_v8, %v778_v8  ;;  %v769_v11 = vmul.f32 %v1320_v5, %v1107_v2 }
 0x14b   : > { %v1322_v18 = vpop.eup %1321 }
 0x14c   : > { %v796_v14 = vmul.f32 %v1111_v7, %v781_v59  ;;  %v788_v20 = vmul.f32 0.080537446, %v783_v10  ;;  %v777_v21 = vsel %vm752_vm12, %v769_v11, %v1713_v25  ;;  %v775_v26 = vmul.f32 %v1322_v18, %v1110_v15 }
 0x14d   : > { %v782_v23 = vmul.f32 %v777_v21, %v777_v21 }
 0x14e   : > { %v801_v22 = vadd.f32 0.19977711, %v796_v14  ;;  %v1113_v29 = vadd.f32 -0.13877685, %v788_v20  ;;  %v780_v35 = vsel %vm755_vm13, %v775_v26, %v1724_v40 }
 0x14f   : > { %v787_v34 = vmul.f32 0.080537446, %v782_v23  ;;  %v785_v33 = vmul.f32 %v780_v35, %v780_v35 }
 0x150   : > { %v806_v31 = vmul.f32 %v801_v22, %v781_v59  ;;  %v798_v36 = vmul.f32 %v1113_v29, %v783_v10 }
 0x151   : > { %v1112_v42 = vadd.f32 -0.13877685, %v787_v34  ;;  %v790_v45 = vmul.f32 0.080537446, %v785_v33 }
 0x152   : > { %v1116_v41 = vadd.f32 -0.3333295, %v806_v31  ;;  %v803_v43 = vadd.f32 0.19977711, %v798_v36 }
 0x153   : > { %v797_v48 = vmul.f32 %v1112_v42, %v782_v23  ;;  %v1115_v52 = vadd.f32 -0.13877685, %v790_v45 }
 0x154   : > { %v816_v46 = vmul.f32 %v1116_v41, %v781_v59  ;;  %v808_v50 = vmul.f32 %v803_v43, %v783_v10 }
 0x155   : > { %v1324_v39 = vpop.eup %1323  ;;  %v802_v54 = vadd.f32 0.19977711, %v797_v48  ;;  %v800_v62 = vmul.f32 %v1115_v52, %v785_v33 }
 0x156   : > { %v821_v53 = vmul.f32 %v816_v46, %v776_v57  ;;  %v773_v61 = vmul.f32 %v1324_v39, %v1109_v49  ;;  %v1118_v56 = vadd.f32 -0.3333295, %v808_v50 }
 0x157   : > { %v807_v1 = vmul.f32 %v802_v54, %v782_v23  ;;  %v805_v5 = vadd.f32 0.19977711, %v800_v62 }
 0x158   : > { %v826_v0 = vadd.f32 %v821_v53, %v776_v57  ;;  %v779_v2 = vsel %vm754_vm14, %v773_v61, %v1738_v55  ;;  %v818_v59 = vmul.f32 %v1118_v56, %v783_v10 }
 0x159   : > { %v784_v7 = vmul.f32 %v779_v2, %v779_v2  ;;  %v1117_v14 = vadd.f32 -0.3333295, %v807_v1  ;;  %v810_v18 = vmul.f32 %v805_v5, %v785_v33 }
 0x15a   : > { %v831_v11 = vadd.f32 0.7853982, %v826_v0  ;;  %v823_v15 = vmul.f32 %v818_v59, %v778_v8 }
 0x15b   : > { %v789_v20 = vmul.f32 0.080537446, %v784_v7  ;;  %v817_v26 = vmul.f32 %v1117_v14, %v782_v23  ;;  %v1120_v57 = vadd.f32 -0.3333295, %v810_v18 }
 0x15c   : > { %v836_v22 = vsel %vm751_vm9, %v831_v11, %v826_v0  ;;  %v828_v31 = vadd.f32 %v823_v15, %v778_v8 }
 0x15d   : > { %v846_v29 = vsub.f32 1.5707964, %v836_v22  ;;  %v1114_v34 = vadd.f32 -0.13877685, %v789_v20  ;;  %v822_v36 = vmul.f32 %v817_v26, %v777_v21  ;;  %v820_v42 = vmul.f32 %v1120_v57, %v785_v33 }
 0x15e   : > { %v833_v41 = vadd.f32 0.7853982, %v828_v31 }
 0x15f   : > { %v851_v10 = vsel %vm841_vm1, %v846_v29, %v836_v22  ;;  %v799_v43 = vmul.f32 %v1114_v34, %v784_v7  ;;  %v827_v46 = vadd.f32 %v822_v36, %v777_v21  ;;  %v825_v23 = vmul.f32 %v820_v42, %v780_v35 }
 0x160   : > { %v861_v45 = vsub.f32 3.1415927, %v851_v10  ;;  %v838_v60 = vsel %vm753_vm10, %v833_v41, %v828_v31  ;;  %vm871_vm1 = vcmp.lt.f32.partialorder %v1573_v63, 0.0 }
 0x161   : > { %v804_v8 = vadd.f32 0.19977711, %v799_v43  ;;  %v848_v49 = vsub.f32 1.5707964, %v838_v60  ;;  %v832_v39 = vadd.f32 0.7853982, %v827_v46  ;;  %v830_v6 = vadd.f32 %v825_v23, %v780_v35 }
 0x162   : > { %v866_v48 = vsel %vm856_vm15, %v861_v45, %v851_v10 }
 0x163   : > { %v876_v3 = vsub.f32 0.0, %v866_v48  ;;  %v809_v21 = vmul.f32 %v804_v8, %v784_v7  ;;  %v853_v58 = vsel %vm843_vm3, %v848_v49, %v838_v60  ;;  %v837_v13 = vsel %vm752_vm12, %v832_v39, %v827_v46 }
 0x164   : > { %v863_v50 = vsub.f32 3.1415927, %v853_v58  ;;  %v847_v52 = vsub.f32 1.5707964, %v837_v13  ;;  %v835_v53 = vadd.f32 0.7853982, %v830_v6 }
 0x165   : > { %v881_v33 = vsel %vm871_vm1, %v876_v3, %v866_v48  ;;  %v1119_v54 = vadd.f32 -0.3333295, %v809_v21  ;;  %vm857_vm3 = vcmp.lt.f32.partialorder %v1587_v9, 0.0 }
 0x166   : > { %886 = vst [vmem:[%s1777_s20] sm:$0xff] %v881_v33  ;;  %v868_v35 = vsel %vm858_vm0, %v863_v50, %v853_v58  ;;  %v852_v63 = vsel %vm842_vm5, %v847_v52, %v837_v13  ;;  %v840_v16 = vsel %vm755_vm13, %v835_v53, %v830_v6  ;;  %vm860_vm5 = vcmp.lt.f32.partialorder %v1603_v17, 0.0 }
 0x167   : > { %v878_v19 = vsub.f32 0.0, %v868_v35  ;;  %v862_v25 = vsub.f32 3.1415927, %v852_v63  ;;  %v850_v61 = vsub.f32 1.5707964, %v840_v16  ;;  %v819_v56 = vmul.f32 %v1119_v54, %v784_v7 }
 0x169   : > { %v883_v4 = vsel %vm873_vm2, %v878_v19, %v868_v35  ;;  %v867_v62 = vsel %vm857_vm3, %v862_v25, %v852_v63  ;;  %v855_v0 = vsel %vm845_vm7, %v850_v61, %v840_v16  ;;  %v824_v28 = vmul.f32 %v819_v56, %v779_v2 }
 0x16a   : > { %888 = vst [vmem:[%s1777_s20 + $0x10] sm:$0xff] %v883_v4  ;;  %v877_v30 = vsub.f32 0.0, %v867_v62  ;;  %v865_v40 = vsub.f32 3.1415927, %v855_v0  ;;  %vm859_vm7 = vcmp.lt.f32.partialorder %v1647_v38, 0.0 }
 0x16b   : > { %v829_v1 = vadd.f32 %v824_v28, %v779_v2 }
 0x16c   : > { %v882_v59 = vsel %vm872_vm4, %v877_v30, %v867_v62  ;;  %v870_v9 = vsel %vm860_vm5, %v865_v40, %v855_v0 }
 0x16d   : > { %887 = vst [vmem:[%s1777_s20 + $0x8] sm:$0xff] %v882_v59  ;;  %v880_v12 = vsub.f32 0.0, %v870_v9  ;;  %v834_v5 = vadd.f32 0.7853982, %v829_v1 }
 0x16f   : > { %v885_v32 = vsel %vm875_vm6, %v880_v12, %v870_v9  ;;  %v839_v37 = vsel %vm754_vm14, %v834_v5, %v829_v1 }
 0x170   : > { %890 = vst [vmem:[%s1777_s20 + $0x20] sm:$0x1] %v885_v32  ;;  %v849_v7 = vsub.f32 1.5707964, %v839_v37 }
 0x172   : > { %v854_v17 = vsel %vm844_vm11, %v849_v7, %v839_v37 }
 0x173   : > { %v864_v24 = vsub.f32 3.1415927, %v854_v17 }
 0x175   : > { %v869_v2 = vsel %vm859_vm7, %v864_v24, %v854_v17 }
 0x176   : > { %v879_v11 = vsub.f32 0.0, %v869_v2 }
 0x178   : > { %v884_v14 = vsel %vm874_vm8, %v879_v11, %v869_v2 }
 0x179   : > { %889 = vst [vmem:[%s1777_s20 + $0x18] sm:$0xff] %v884_v14 }
 0x17a PF: > { %s14_s14 = sadd.s32 1, %s1347_s14   ;;  %s1824_s12 = smov %s1343_s13 }
 0x17b   : > { %p11_p5 = scmp.ge.s32.totalorder %s14_s14, 4   ;;  %s1825_s13 = smov %s1827_s15 }
 0x17d   :  { %13 = sbr.rel (!%p11_p5) target bundleno = 2 (0x2), region = 73 }

</bundles_post_ra>
